<compile_context>
chip_gen: v6e
topology: v6e:2x2x1
jax: 0.10.0
libtpu: 0.0.40
codegen_flags: <defaults>
</compile_context>

<pallas_src>
import functools
import math

import jax
import jax.numpy as jnp
from jax.experimental import pallas as pl
from jax.experimental.pallas import tpu as pltpu

_MAX_LANE_TILE = 2048  # 512-2048 lanes is where the HBM roofline saturates.


@functools.lru_cache(maxsize=None)
def _vmem_budgets():
    """(live-block budget, scoped vmem limit) in bytes, generation-aware.

    v5e/v6e have 128 MiB VMEM per TensorCore -> spend ~64 MiB on live blocks.
    v7x has 64 MiB per TC (and query failure) -> conservative 24/48 MiB.
    """
    vmem_bytes = 64 * 1024 * 1024
    try:
        info = pltpu.get_tpu_info()
        vmem_bytes = int(getattr(info, "vmem_capacity_bytes", vmem_bytes))
    except Exception:
        pass
    if vmem_bytes >= 96 * 1024 * 1024:
        return 64 * 1024 * 1024, 100 * 1024 * 1024
    return 24 * 1024 * 1024, 48 * 1024 * 1024


def _round_up(x, m):
    return ((x + m - 1) // m) * m


def _sublane_unit(dtype):
    """Native sublane tiling for the second-to-last block dim of this dtype."""
    itemsize = jnp.dtype(dtype).itemsize
    return max(8, 8 * (4 // itemsize))  # 8 f32, 16 bf16, 32 int8/fp8


def _tile_and_pad(total, unit, max_elems):
    """Choose a block extent along one axis.

    Returns (tile, padded_total) such that either
      * tile == padded_total == total (whole axis in one legal full-extent
        block), or
      * tile is a multiple of `unit`, tile <= max_elems, and tile divides
        padded_total (padded_total >= total; caller zero-pads).
    """
    max_elems = max(unit, (max_elems // unit) * unit)
    if total <= max_elems:
        return total, total
    t = max_elems
    while t >= unit:
        if total % t == 0:
            return t, total
        t -= unit
    # No exact divisor within budget: keep the largest tile and pad the axis.
    return max_elems, _round_up(total, max_elems)


# ----------------------------- kernels -------------------------------------


def _mean_sublane_kernel(x_ref, o_ref, *, inv_red):
    # x_ref: (tile_outer, tile_red, lane_tile); whole reduction in one block.
    o_ref[...] = (jnp.sum(x_ref[...], axis=1, dtype=jnp.float32)
                  * inv_red).astype(o_ref.dtype)


def _mean_sublane_acc_kernel(x_ref, o_ref, acc_ref, *, inv_red):
    # x_ref: (tile_outer, tile_red, lane_tile); reduce over axis 1 (sublanes).
    k = pl.program_id(2)
    s = jnp.sum(x_ref[...], axis=1, dtype=jnp.float32)

    @pl.when(k == 0)
    def _():
        acc_ref[...] = s

    @pl.when(k > 0)
    def _():
        acc_ref[...] += s

    @pl.when(k == pl.num_programs(2) - 1)
    def _():
        o_ref[...] = (acc_ref[...] * inv_red).astype(o_ref.dtype)


def _mean_lane_kernel(x_ref, o_ref, *, inv_red):
    # x_ref: (tile_g, 128, tile_red); whole reduction (lane axis) in one block.
    o_ref[...] = (jnp.sum(x_ref[...], axis=-1, dtype=jnp.float32)
                  * inv_red).astype(o_ref.dtype)


def _mean_lane_acc_kernel(x_ref, o_ref, acc_ref, *, inv_red):
    # x_ref: (tile_g, 128, tile_red); reduce over the last (lane) axis.
    k = pl.program_id(1)
    s = jnp.sum(x_ref[...], axis=-1, dtype=jnp.float32)

    @pl.when(k == 0)
    def _():
        acc_ref[...] = s

    @pl.when(k > 0)
    def _():
        acc_ref[...] += s

    @pl.when(k == pl.num_programs(1) - 1)
    def _():
        o_ref[...] = (acc_ref[...] * inv_red).astype(o_ref.dtype)


# ----------------------------- drivers --------------------------------------


def _mean_last_axis(x2d, live_budget, vmem_limit, cost):
    """Lane-dense path for inner == 1: x2d is (outer, red), reduce last axis."""
    outer, red = x2d.shape
    itemsize = jnp.dtype(x2d.dtype).itemsize
    sub_unit = _sublane_unit(x2d.dtype)
    inv_red = 1.0 / float(red)

    g = -(-outer // 128)  # groups of 128 output rows -> 128 output lanes

    # Reduce axis sits on lanes: tile in multiples of 128, within budget.
    max_red = max(128, live_budget // (2 * sub_unit * 128 * itemsize))
    tile_red, red_p = _tile_and_pad(red, 128, min(max_red, _MAX_LANE_TILE))
    red_eff = _round_up(tile_red, 128)

    # Budget: input (x2 buffers) + output (x2) + f32 acc, per group row.
    per_g = 128 * (2 * red_eff * itemsize + 2 * itemsize + 4)
    max_g = max(sub_unit, live_budget // per_g)
    if g >= 2 * sub_unit:  # keep both v7x TensorCores busy
        max_g = min(max_g, g // 2)
    tile_g, g_p = _tile_and_pad(g, sub_unit, max_g)

    outer_p = g_p * 128
    if outer_p != outer or red_p != red:
        x2d = jnp.pad(x2d, ((0, outer_p - outer), (0, red_p - red)))
    xr = x2d.reshape(g_p, 128, red_p)

    red_steps = red_p // tile_red
    if red_steps == 1:
        kernel = functools.partial(_mean_lane_kernel, inv_red=inv_red)
        scratch = []
    else:
        kernel = functools.partial(_mean_lane_acc_kernel, inv_red=inv_red)
        scratch = [pltpu.VMEM((tile_g, 128), jnp.float32)]

    out2d = pl.pallas_call(
        kernel,
        out_shape=jax.ShapeDtypeStruct((g_p, 128), x2d.dtype),
        grid_spec=pltpu.PrefetchScalarGridSpec(
            num_scalar_prefetch=0,
            grid=(g_p // tile_g, red_steps),
            in_specs=[pl.BlockSpec((tile_g, 128, tile_red),
                                   lambda i, k: (i, 0, k))],
            out_specs=pl.BlockSpec((tile_g, 128), lambda i, k: (i, 0)),
            scratch_shapes=scratch,
        ),
        compiler_params=pltpu.CompilerParams(
            dimension_semantics=("parallel", "arbitrary"),
            vmem_limit_bytes=vmem_limit,
        ),
        cost_estimate=cost,
    )(xr)
    return out2d.reshape(outer_p)[:outer]


def _mean_generic(x3, live_budget, vmem_limit, cost):
    """Generic path: x3 is (outer, red, inner); reduce the middle axis."""
    outer, red, inner = x3.shape
    itemsize = jnp.dtype(x3.dtype).itemsize
    sub_unit = _sublane_unit(x3.dtype)
    inv_red = 1.0 / float(red)

    # TODO(synk): for tiny inner (< 128) a wrapper-side transpose/merge could
    # recover full lane occupancy; we only account for the padding here.
    lane_tile, inner_p = _tile_and_pad(inner, 128, _MAX_LANE_TILE)
    lane_eff = _round_up(lane_tile, 128)  # VMEM pads the lane dim to 128

    # Reduce tile (sublanes), budgeted at tile_outer == sub_unit rows.
    fixed = sub_unit * lane_eff * (2 * itemsize + 4)    # out (x2) + f32 acc
    denom = sub_unit * lane_eff * 2 * itemsize          # input (x2) per elem
    max_red = max(sub_unit, (live_budget - fixed) // denom)
    tile_red, red_p = _tile_and_pad(red, sub_unit, max_red)
    red_eff = _round_up(tile_red, sub_unit)

    # Outer tile: grow until the live set hits the budget.
    per_outer = lane_eff * (2 * red_eff * itemsize + 2 * itemsize + 4)
    max_outer = max(sub_unit, live_budget // per_outer)
    if inner_p // lane_tile < 2 and outer >= 2 * sub_unit:
        max_outer = min(max_outer, outer // 2)  # keep both v7x TCs busy
    tile_outer, outer_p = _tile_and_pad(outer, sub_unit, max_outer)

    if (outer_p, red_p, inner_p) != (outer, red, inner):
        x3 = jnp.pad(x3, ((0, outer_p - outer), (0, red_p - red),
                          (0, inner_p - inner)))

    red_steps = red_p // tile_red
    if red_steps == 1:
        kernel = functools.partial(_mean_sublane_kernel, inv_red=inv_red)
        scratch = []
    else:
        kernel = functools.partial(_mean_sublane_acc_kernel, inv_red=inv_red)
        scratch = [pltpu.VMEM((tile_outer, lane_tile), jnp.float32)]

    out2d = pl.pallas_call(
        kernel,
        out_shape=jax.ShapeDtypeStruct((outer_p, inner_p), x3.dtype),
        grid_spec=pltpu.PrefetchScalarGridSpec(
            num_scalar_prefetch=0,
            grid=(outer_p // tile_outer, inner_p // lane_tile, red_steps),
            in_specs=[pl.BlockSpec((tile_outer, tile_red, lane_tile),
                                   lambda i, j, k: (i, k, j))],
            out_specs=pl.BlockSpec((tile_outer, lane_tile),
                                   lambda i, j, k: (i, j)),
            scratch_shapes=scratch,
        ),
        compiler_params=pltpu.CompilerParams(
            dimension_semantics=("parallel", "parallel", "arbitrary"),
            vmem_limit_bytes=vmem_limit,
        ),
        cost_estimate=cost,
    )(x3)
    return out2d[:outer, :inner]


def mean_pool(x, dim, *, _live_budget=None):
    """Pallas equivalent of torch.Tensor.mean(dim=dim) (keepdim=False)."""
    ndim = x.ndim
    dim = dim % ndim
    outer_shape = tuple(x.shape[:dim])
    red = int(x.shape[dim])
    inner_shape = tuple(x.shape[dim + 1:])
    out_shape = outer_shape + inner_shape

    outer = int(math.prod(outer_shape))
    inner = int(math.prod(inner_shape))

    # Degenerate shapes (match torch semantics without launching a kernel).
    if red == 0:
        return jnp.full(out_shape, jnp.nan, dtype=x.dtype)
    if outer == 0 or inner == 0:
        return jnp.zeros(out_shape, dtype=x.dtype)

    itemsize = jnp.dtype(x.dtype).itemsize
    live_budget, vmem_limit = _vmem_budgets()
    if _live_budget is not None:
        live_budget = int(_live_budget)

    cost = pl.CostEstimate(
        flops=outer * red * inner,
        transcendentals=0,
        bytes_accessed=int(outer * red * inner * itemsize
                           + outer * inner * itemsize),
    )

    if inner == 1:
        out = _mean_last_axis(x.reshape(outer, red),
                              live_budget, vmem_limit, cost)
    else:
        out = _mean_generic(x.reshape(outer, red, inner),
                            live_budget, vmem_limit, cost)
    return out.reshape(out_shape)


class MeanPool:
    """Mirror of the PyTorch module: MeanPool(dim)(x) == x.mean(dim=dim)."""

    def __init__(self, dim):
        self.dim = dim

    def __call__(self, x):
        return mean_pool(x, self.dim)


if __name__ == "__main__":
    key = jax.random.PRNGKey(0)
    k0, k1, k2 = jax.random.split(key, 3)

    # Small NCHW-like feature map (module's typical use: channel/time mean).
    x = jax.random.normal(k0, (2, 4, 16, 16), dtype=jnp.float32)

    # dim=1 (channel mean) -> generic sublane path.
    out = jax.block_until_ready(MeanPool(dim=1)(x))
    ref = jnp.mean(x, axis=1)
    assert out.shape == ref.shape, (out.shape, ref.shape)
    assert jnp.allclose(out, ref, atol=1e-5, rtol=1e-5)

    # dim=-1 -> lane-dense path (outer = 128, no padding needed).
    out = jax.block_until_ready(MeanPool(dim=-1)(x))
    ref = jnp.mean(x, axis=-1)
    assert out.shape == ref.shape, (out.shape, ref.shape)
    assert jnp.allclose(out, ref, atol=1e-5, rtol=1e-5)

    # dim=0 -> generic path with outer == 1.
    out = jax.block_until_ready(MeanPool(dim=0)(x))
    ref = jnp.mean(x, axis=0)
    assert out.shape == ref.shape, (out.shape, ref.shape)
    assert jnp.allclose(out, ref, atol=1e-5, rtol=1e-5)

    # Awkward (non-divisible) shape: last-axis mean pads outer 15 -> 128.
    y = jax.random.normal(k1, (3, 5, 7), dtype=jnp.float32)
    for d in range(3):
        out = jax.block_until_ready(MeanPool(dim=d)(y))
        ref = jnp.mean(y, axis=d)
        assert out.shape == ref.shape, (d, out.shape, ref.shape)
        assert jnp.allclose(out, ref, atol=1e-5, rtol=1e-5)

    # Force the multi-step accumulator kernels with a tiny live budget.
    z = jax.random.normal(k2, (16, 64, 128), dtype=jnp.float32)
    out = jax.block_until_ready(mean_pool(z, 1, _live_budget=128 * 1024))
    ref = jnp.mean(z, axis=1)
    assert jnp.allclose(out, ref, atol=1e-5, rtol=1e-5)

    w = jax.random.normal(k0, (128, 300), dtype=jnp.float32)
    out = jax.block_until_ready(mean_pool(w, 1, _live_budget=128 * 1024))
    ref = jnp.mean(w, axis=1)
    assert jnp.allclose(out, ref, atol=1e-4, rtol=1e-4)

    # bf16 input exercises the dtype-aware (16,128) sublane tiling.
    xb = x.astype(jnp.bfloat16)
    out = jax.block_until_ready(MeanPool(dim=1)(xb))
    ref = jnp.mean(xb.astype(jnp.float32), axis=1).astype(jnp.bfloat16)
    assert out.shape == ref.shape, (out.shape, ref.shape)
    assert jnp.allclose(out.astype(jnp.float32), ref.astype(jnp.float32),
                        atol=2e-2, rtol=2e-2)

    print("KERNEL_OK")
</pallas_src>

<mosaic_0001>
module attributes {stable_mosaic.version = 11 : i64} {
  func.func @_mean_sublane_kernel(%arg0: i32, %arg1: i32, %arg2: i32, %arg3: memref<2x4x256xf32, #tpu.memory_space<vmem>>, %arg4: memref<2x256xf32, #tpu.memory_space<vmem>>) attributes {dimension_semantics = [#tpu.dimension_semantics<parallel>, #tpu.dimension_semantics<parallel>, #tpu.dimension_semantics<arbitrary>], iteration_bounds = array<i64: 1, 1, 1>, scalar_prefetch = 0 : i64, scratch_operands = 0 : i64, tpu.core_type = #tpu.core_type<tc>, window_params = [{transform_indices = @transform_0, window_bounds = array<i64: 2, 4, 256>}, {transform_indices = @transform_1, window_bounds = array<i64: 2, 256>}]} {
    %c0 = arith.constant 0 : index
    %c0_0 = arith.constant 0 : index
    %c0_1 = arith.constant 0 : index
    %0 = vector.load %arg3[%c0, %c0_0, %c0_1] : memref<2x4x256xf32, #tpu.memory_space<vmem>>, vector<2x4x256xf32>
    %cst = arith.constant dense<0.000000e+00> : vector<2x256xf32>
    %1 = vector.multi_reduction <add>, %0, %cst [1] : vector<2x4x256xf32> to vector<2x256xf32>
    %cst_2 = arith.constant 2.500000e-01 : f32
    %2 = vector.broadcast %cst_2 : f32 to vector<2x256xf32>
    %3 = arith.mulf %1, %2 : vector<2x256xf32>
    %c0_3 = arith.constant 0 : index
    %c0_4 = arith.constant 0 : index
    %4 = vector.load %arg4[%c0_3, %c0_4] : memref<2x256xf32, #tpu.memory_space<vmem>>, vector<2x256xf32>
    tpu.vector_store %arg4[%c0_3, %c0_4], %3 {strides = array<i32>} : memref<2x256xf32, #tpu.memory_space<vmem>>, vector<2x256xf32>,
    return
  }
  func.func @transform_0(%arg0: i32, %arg1: i32, %arg2: i32) -> (i32, i32, i32) {
    %c0_i32 = arith.constant 0 : i32
    return %arg0, %arg2, %arg1 : i32, i32, i32
  }
  func.func @transform_1(%arg0: i32, %arg1: i32, %arg2: i32) -> (i32, i32) {
    %c0_i32 = arith.constant 0 : i32
    return %arg0, %arg1 : i32, i32
  }
}

</mosaic_0001>

<bundles_post_ra>
// kernel: tpu_custom_call.1
= control target key start
LH: loop header
LB: loop body
LE: loop exit
PB: predicated region body
PF: predicated region fallthrough
CT: control target
= control target key end

     0   :  { %6 = vsyncpa [#allocation3], 0  ;;  %s186_s0 = inlined_call_operand.hbm [shape: f32[2,4,256], index: 0, kind: input, shape index: {}]   ;;  %s187_s1 = inlined_call_operand.hbm [shape: f32[2,256], index: 1, kind: output, shape index: {}]  }
   0x1   :  { %7 = vsyncpa [#allocation4], 0  ;;  %s165_s6 = smov [#allocation2]  }
   0x2   :  { %s13_s7 = sshll.u32 %s165_s6, 4  ;;  %s14_s7 = int_to_ptr.vmem [resolvable:$true] %s13_s7 }
   0x3   :  { %s129_s8 = scalar_lea.vmem %s14_s7, 256  ;;  %p134_p1 = scmp.lt.s32.totalorder %s14_s7, %s14_s7 }
   0x4   :  { %p130_p0 = scmp.ne.s32.totalorder %s14_s7, %s129_s8  ;;  %p135_p2 = scmp.lt.s32.totalorder %s129_s8, %s129_s8 }
   0x6   :  { %p136_p3 = por %p135_p2, %p134_p1 }
   0x8   :  { %p137_p4 = pnand %p136_p3, %p130_p0 }
   0xa   :  { %140 = shalt.err (!%p137_p4)
}
   0xb   :  { %s166_s9 = smov 128   ;;  %s167_s10 = smov 8  }
   0xc   :  { %19 = dma.hbm_to_vmem [thread:$0]  %s186_s0, 256, %s14_s7, [#allocation3], %s166_s9, %s166_s9, %s167_s10  }
   0xd   :  { %161 = dma.done.wait [#allocation3], 256  }
   0xe   :  { %162 = vsyncadd [#allocation3], 4294967040  ;;  %vm31_vm0 = vcmask 1043456   ;;  %v23_v0 = vld [vmem:[#allocation2] sm:$0xff]  ;;  %v24_v1 = vld [vmem:[#allocation2 + $0x8] sm:$0xff]  ;;  %v72_v20 = vlaneseq  ;;  %vm89_vm1 = vcmask 1041409  }
   0xf   :  { %v27_v2 = vcombine.high %v23_v0, %v23_v0  ;;  %v28_v3 = vcombine.high %v24_v1, %v24_v1  ;;  %v32_v4 = vsel %vm31_vm0, %v23_v0, 0.0  ;;  %v46_v5 = vsel %vm31_vm0, %v24_v1, 0.0  ;;  %s169_s0 = smov [#allocation5]  }
  0x10   :  { %v33_v6 = vrot.slane %v32_v4, 4  ;;  %v47_v7 = vrot.slane %v46_v5, 4  ;;  %v168_v18 = vmov 1983009808   ;;  %v73_v30 = vshrl.u32 %v72_v20, 7  ;;  %s105_s13 = sshll.u32 %s169_s0, 4  ;;  %s106_s13 = int_to_ptr.vmem [resolvable:$true] %s105_s13 }
  0x11   :  { %v39_v8 = vsel %vm31_vm0, %v27_v2, 0.0  ;;  %v53_v9 = vsel %vm31_vm0, %v28_v3, 0.0  ;;  %v70_v19 = vunpack.c.l.s4 %v168_v18  ;;  %vm91_vm2 = vcmask 1043459   ;;  %s141_s14 = scalar_lea.vmem %s106_s13, 64  ;;  %p146_p6 = scmp.lt.s32.totalorder %s106_s13, %s106_s13 }
  0x12   :  { %v34_v10 = vadd.f32 %v33_v6, %v32_v4  ;;  %v40_v11 = vrot.slane %v39_v8, 4  ;;  %v48_v12 = vadd.f32 %v47_v7, %v46_v5  ;;  %v54_v13 = vrot.slane %v53_v9, 4  ;;  %p142_p5 = scmp.ne.s32.totalorder %s106_s13, %s141_s14  ;;  %p147_p7 = scmp.lt.s32.totalorder %s141_s14, %s141_s14 }
  0x13   :  { %v71_v29 = vunpack.c.0.s8 %v70_v19  ;;  %vm93_vm3 = vcmask 1045509   ;;  %vm95_vm4 = vcmask 1047559  }
  0x14   :  { %v35_v14 = vrot.slane %v34_v10, 2  ;;  %v41_v15 = vadd.f32 %v40_v11, %v39_v8  ;;  %v49_v16 = vrot.slane %v48_v12, 2  ;;  %v55_v17 = vadd.f32 %v54_v13, %v53_v9  ;;  %p148_p8 = por %p147_p7, %p146_p6 }
  0x15   :  { %v74_v41 = vsub.s32 %v71_v29, %v73_v30 }
  0x16   :  { %v36_v21 = vadd.f32 %v35_v14, %v34_v10  ;;  %v42_v22 = vrot.slane %v41_v15, 2  ;;  %v50_v23 = vadd.f32 %v49_v16, %v48_v12  ;;  %v56_v24 = vrot.slane %v55_v17, 2  ;;  %p149_p9 = pnand %p148_p8, %p142_p5 }
  0x18   :  { %v37_v25 = vrot.slane %v36_v21, 1  ;;  %v43_v26 = vadd.f32 %v42_v22, %v41_v15  ;;  %v51_v27 = vrot.slane %v50_v23, 1  ;;  %v57_v28 = vadd.f32 %v56_v24, %v55_v17 }
  0x1a   :  { %v38_v31 = vadd.f32 %v37_v25, %v36_v21  ;;  %v44_v32 = vrot.slane %v43_v26, 1  ;;  %v52_v33 = vadd.f32 %v51_v27, %v50_v23  ;;  %v58_v34 = vrot.slane %v57_v28, 1 }
  0x1c   :  { %v45_v35 = vadd.f32 %v44_v32, %v43_v26  ;;  %v59_v36 = vadd.f32 %v58_v34, %v57_v28  ;;  %v60_v37 = vmul.f32 0.25, %v38_v31  ;;  %v62_v38 = vmul.f32 0.25, %v52_v33 }
  0x1e   :  { %v61_v39 = vmul.f32 0.25, %v45_v35  ;;  %v63_v40 = vmul.f32 0.25, %v59_v36 }
  0x20   :  { %v68_v42 = vcombine.low %v60_v37, %v61_v39  ;;  %v76_v43 = vcombine.low %v62_v38, %v63_v40 }
  0x22   :  { %v75_v44 = vrot.slane %v68_v42, %v74_v41  ;;  %v83_v45 = vrot.slane %v76_v43, %v74_v41 }
  0x24   :  { %v88_v46 = vrot.slane %v83_v45, 7 }
  0x26   :  { %v90_v47 = vsel %vm89_vm1, %v88_v46, %v75_v44 }
  0x27   :  { %v92_v48 = vsel %vm91_vm2, %v88_v46, %v90_v47 }
  0x28   :  { %v94_v49 = vsel %vm93_vm3, %v88_v46, %v92_v48 }
  0x29   :  { %v96_v50 = vsel %vm95_vm4, %v88_v46, %v94_v49 }
  0x2a   :  { %98 = vst [vmem:[#allocation5] sm:$0xf] %v96_v50 }
  0x2b   :  { %152 = shalt.err (!%p149_p9)
}
  0x2c   :  { %108 = dma.vmem_to_hbm [thread:$0]  %s106_s13, 64, %s187_s1, [#allocation4]  }
  0x2d   :  { %163 = dma.done.wait [#allocation4], 64  }
  0x2e   :  { %164 = vsyncadd [#allocation4], 4294967232 }
  0x2f   :  { %112 = vsyncpa [#allocation3], 1 }
  0x30   :  { %113 = vsyncpa [#allocation4], 1 }

</bundles_post_ra>
